<compile_context>
chip_gen: v6e
topology: v6e:2x2x1
jax: 0.10.0
libtpu: 0.0.40
codegen_flags: <defaults>
</compile_context>

<pallas_src>
import functools

import jax
import jax.numpy as jnp
from jax import lax
from jax.experimental import pallas as pl
from jax.experimental.pallas import tpu as pltpu


# ---------------------------------------------------------------------------
# Input-projection kernel: (rows, D) @ (D, G) + (1, G) -> (rows, G) in f32.
# One big parallel matmul for the whole sequence — removes half the MXU work
# from the strictly sequential recurrence.
# ---------------------------------------------------------------------------
def _proj_kernel(x_ref, w_ref, b_ref, o_ref):
    o_ref[...] = (jnp.dot(x_ref[...], w_ref[...],
                          preferred_element_type=jnp.float32)
                  + b_ref[...])


def _input_projection(x_2d, w, b, row_block=512):
    """x_2d: (R, D) f32, w: (D, G), b: (1, G) -> (R, G) f32."""
    R, D = x_2d.shape
    G = w.shape[-1]
    if R <= row_block:
        # Small enough: single full-block call (block == full array, so the
        # (8,128) divisibility constraint does not apply).
        return pl.pallas_call(
            _proj_kernel,
            out_shape=jax.ShapeDtypeStruct((R, G), jnp.float32),
        )(x_2d, w, b)

    # Row-tiled, pipelined version for long sequences / big batches.
    n_blk = pl.cdiv(R, row_block)
    Rp = n_blk * row_block
    xp = jnp.pad(x_2d, ((0, Rp - R), (0, 0)))
    out = pl.pallas_call(
        _proj_kernel,
        out_shape=jax.ShapeDtypeStruct((Rp, G), jnp.float32),
        grid=(n_blk,),
        in_specs=[pl.BlockSpec((row_block, D), lambda i: (i, 0)),
                  pl.BlockSpec((D, G), lambda i: (0, 0)),
                  pl.BlockSpec((1, G), lambda i: (0, 0))],
        out_specs=pl.BlockSpec((row_block, G), lambda i: (i, 0)),
        compiler_params=pltpu.CompilerParams(
            dimension_semantics=("parallel",)),
    )(xp, w, b)
    return out[:R]


# ---------------------------------------------------------------------------
# GRU recurrence kernel: whole layer in one kernel invocation.
#   gx_ref : (T, B, 3H) precomputed x@W_i + folded biases (f32)
#   wh_ref : (H, 3H) fused hidden weights (gate order r, z, n)
#   bhn_ref: (1, H)  the n-gate hidden bias (cannot be folded)
# ---------------------------------------------------------------------------
def _gru_rec_kernel(gx_ref, wh_ref, bhn_ref, out_ref, hT_ref):
    T, B, _ = gx_ref.shape
    H = hT_ref.shape[-1]
    wh = wh_ref[...]          # resident across the whole time loop
    bhn = bhn_ref[...]

    def step(t, h_prev):
        gx = gx_ref[t]                                           # (B, 3H)
        gh = jnp.dot(h_prev, wh, preferred_element_type=jnp.float32)
        r = jax.nn.sigmoid(gx[:, 0:H] + gh[:, 0:H])
        z = jax.nn.sigmoid(gx[:, H:2 * H] + gh[:, H:2 * H])
        n = jnp.tanh(gx[:, 2 * H:3 * H] + r * (gh[:, 2 * H:3 * H] + bhn))
        h_new = (1.0 - z) * n + z * h_prev
        out_ref[t] = h_new.astype(out_ref.dtype)
        return h_new

    h_last = lax.fori_loop(0, T, step, jnp.zeros((B, H), jnp.float32))
    hT_ref[...] = h_last.astype(hT_ref.dtype)


# ---------------------------------------------------------------------------
# LSTM recurrence kernel.
#   gx_ref : (T, B, 4H) precomputed x@W_i + (b_i + b_h) (f32)
#   wh_ref : (H, 4H) fused hidden weights (gate order i, f, g, o)
# ---------------------------------------------------------------------------
def _lstm_rec_kernel(gx_ref, wh_ref, out_ref, hT_ref, cT_ref):
    T, B, _ = gx_ref.shape
    H = hT_ref.shape[-1]
    wh = wh_ref[...]

    def step(t, carry):
        h_prev, c_prev = carry
        g = gx_ref[t] + jnp.dot(h_prev, wh, preferred_element_type=jnp.float32)
        i = jax.nn.sigmoid(g[:, 0:H])
        f = jax.nn.sigmoid(g[:, H:2 * H])
        gg = jnp.tanh(g[:, 2 * H:3 * H])
        o = jax.nn.sigmoid(g[:, 3 * H:4 * H])
        c_new = f * c_prev + i * gg
        h_new = o * jnp.tanh(c_new)
        out_ref[t] = h_new.astype(out_ref.dtype)
        return (h_new, c_new)

    h_last, c_last = lax.fori_loop(
        0, T, step,
        (jnp.zeros((B, H), jnp.float32), jnp.zeros((B, H), jnp.float32)))
    hT_ref[...] = h_last.astype(hT_ref.dtype)
    cT_ref[...] = c_last.astype(cT_ref.dtype)


# ---------------------------------------------------------------------------
# Per-layer wrappers: fuse/fold parameters, run projection + recurrence.
# ---------------------------------------------------------------------------
def _gru_layer(x_tbd, wi, wh, bi, bh):
    T, B, D = x_tbd.shape
    H = wh.shape[-1]
    wi_f = jnp.transpose(wi, (1, 0, 2)).reshape(D, 3 * H)
    wh_f = jnp.transpose(wh, (1, 0, 2)).reshape(H, 3 * H)
    bi_f = jnp.transpose(bi, (1, 0, 2)).reshape(1, 3 * H)
    # Fold b_hr, b_hz into the input projection; b_hn must stay inside
    # r * (h @ W_hn + b_hn) per PyTorch GRU semantics.
    b_fold = bi_f + jnp.concatenate(
        [bh[0], bh[1], jnp.zeros_like(bh[2])], axis=-1)
    bh_n = bh[2]                                           # (1, H)

    gx = _input_projection(x_tbd.reshape(T * B, D), wi_f, b_fold)
    gx = gx.reshape(T, B, 3 * H)

    out, hT = pl.pallas_call(
        _gru_rec_kernel,
        out_shape=(jax.ShapeDtypeStruct((T, B, H), x_tbd.dtype),
                   jax.ShapeDtypeStruct((B, H), x_tbd.dtype)),
    )(gx, wh_f, bh_n)
    return out, hT


def _lstm_layer(x_tbd, wi, wh, bi, bh):
    T, B, D = x_tbd.shape
    H = wh.shape[-1]
    wi_f = jnp.transpose(wi, (1, 0, 2)).reshape(D, 4 * H)
    wh_f = jnp.transpose(wh, (1, 0, 2)).reshape(H, 4 * H)
    # All LSTM gate biases (b_i + b_h) fold into the input projection.
    b_fold = (jnp.transpose(bi, (1, 0, 2)).reshape(1, 4 * H)
              + jnp.transpose(bh, (1, 0, 2)).reshape(1, 4 * H))

    gx = _input_projection(x_tbd.reshape(T * B, D), wi_f, b_fold)
    gx = gx.reshape(T, B, 4 * H)

    out, hT, cT = pl.pallas_call(
        _lstm_rec_kernel,
        out_shape=(jax.ShapeDtypeStruct((T, B, H), x_tbd.dtype),
                   jax.ShapeDtypeStruct((B, H), x_tbd.dtype),
                   jax.ShapeDtypeStruct((B, H), x_tbd.dtype)),
    )(gx, wh_f)
    return out, hT, cT


# ---------------------------------------------------------------------------
# Encoder (matches the PyTorch module's forward semantics; dropout==0).
# ---------------------------------------------------------------------------
def init_encoder_params(key, cell, enc_in, num_hidden, num_layer):
    """Deterministic parameter init (shapes match nn.GRU / nn.LSTM, transposed)."""
    n_gates = 3 if cell == "GRU" else 4
    bound = 1.0 / jnp.sqrt(jnp.float32(num_hidden))
    params = []
    for layer in range(num_layer):
        d_in = enc_in if layer == 0 else num_hidden
        key, k1, k2, k3, k4 = jax.random.split(key, 5)
        wi = jax.random.uniform(k1, (n_gates, d_in, num_hidden), jnp.float32, -bound, bound)
        wh = jax.random.uniform(k2, (n_gates, num_hidden, num_hidden), jnp.float32, -bound, bound)
        bi = jax.random.uniform(k3, (n_gates, 1, num_hidden), jnp.float32, -bound, bound)
        bh = jax.random.uniform(k4, (n_gates, 1, num_hidden), jnp.float32, -bound, bound)
        params.append((wi, wh, bi, bh))
    return params


@functools.partial(jax.jit, static_argnames=("cell",))
def encoder_forward(x_bsd, params, cell="GRU"):
    """x_bsd: (batch, seq, enc_in) -> (output (seq, batch, H), state)."""
    B0 = x_bsd.shape[0]
    x_tbd = jnp.transpose(x_bsd, (1, 0, 2))   # == x.permute(1, 0, 2)

    # Pad batch to a sublane multiple (8) so every (B, H) tile is sublane-dense.
    Bp = ((B0 + 7) // 8) * 8
    if Bp != B0:
        x_tbd = jnp.pad(x_tbd, ((0, 0), (0, Bp - B0), (0, 0)))

    inp = x_tbd
    h_states, c_states = [], []
    # TODO(synk): fuse the layer loop into a single pallas_call keeping the
    # per-layer (T, B, H) activations in VMEM (removes the HBM round-trip per
    # layer); also cast weights to bf16 for the MXU on v6e/v7x at large H.
    for (wi, wh, bi, bh) in params:
        if cell == "GRU":
            out, hT = _gru_layer(inp, wi, wh, bi, bh)
        else:
            out, hT, cT = _lstm_layer(inp, wi, wh, bi, bh)
            c_states.append(cT)
        h_states.append(hT)
        inp = out

    output = inp[:, :B0]
    h_n = jnp.stack(h_states)[:, :B0]
    if cell == "GRU":
        return output, h_n                           # output, h_n
    c_n = jnp.stack(c_states)[:, :B0]
    return output, (h_n, c_n)                        # output, (h_n, c_n)


# ---------------------------------------------------------------------------
# Pure-JAX references (for correctness checking only).
# ---------------------------------------------------------------------------
def _gru_ref(x_bsd, params):
    inp = jnp.transpose(x_bsd, (1, 0, 2))
    states = []
    for (wi, wh, bi, bh) in params:
        B, H = inp.shape[1], wh.shape[-1]

        def step(h, x_t, wi=wi, wh=wh, bi=bi, bh=bh):
            r = jax.nn.sigmoid(x_t @ wi[0] + bi[0] + h @ wh[0] + bh[0])
            z = jax.nn.sigmoid(x_t @ wi[1] + bi[1] + h @ wh[1] + bh[1])
            n = jnp.tanh(x_t @ wi[2] + bi[2] + r * (h @ wh[2] + bh[2]))
            h_new = (1.0 - z) * n + z * h
            return h_new, h_new

        hT, out = jax.lax.scan(step, jnp.zeros((B, H), jnp.float32), inp)
        states.append(hT)
        inp = out
    return inp, jnp.stack(states)


def _lstm_ref(x_bsd, params):
    inp = jnp.transpose(x_bsd, (1, 0, 2))
    h_states, c_states = [], []
    for (wi, wh, bi, bh) in params:
        B, H = inp.shape[1], wh.shape[-1]

        def step(carry, x_t, wi=wi, wh=wh, bi=bi, bh=bh):
            h, c = carry
            i = jax.nn.sigmoid(x_t @ wi[0] + bi[0] + h @ wh[0] + bh[0])
            f = jax.nn.sigmoid(x_t @ wi[1] + bi[1] + h @ wh[1] + bh[1])
            g = jnp.tanh(x_t @ wi[2] + bi[2] + h @ wh[2] + bh[2])
            o = jax.nn.sigmoid(x_t @ wi[3] + bi[3] + h @ wh[3] + bh[3])
            c_new = f * c + i * g
            h_new = o * jnp.tanh(c_new)
            return (h_new, c_new), h_new

        (hT, cT), out = jax.lax.scan(
            step, (jnp.zeros((B, H), jnp.float32), jnp.zeros((B, H), jnp.float32)), inp)
        h_states.append(hT)
        c_states.append(cT)
        inp = out
    return inp, (jnp.stack(h_states), jnp.stack(c_states))


# ---------------------------------------------------------------------------
if __name__ == "__main__":
    B, T, ENC_IN, HIDDEN, LAYERS = 2, 8, 4, 32, 2
    key = jax.random.PRNGKey(0)
    kx, kp_gru, kp_lstm = jax.random.split(key, 3)
    x = jax.random.normal(kx, (B, T, ENC_IN), jnp.float32)

    # --- GRU encoder ---
    gru_params = init_encoder_params(kp_gru, "GRU", ENC_IN, HIDDEN, LAYERS)
    out_g, h_g = encoder_forward(x, gru_params, cell="GRU")
    jax.block_until_ready((out_g, h_g))
    out_ref, h_ref = _gru_ref(x, gru_params)
    assert out_g.shape == (T, B, HIDDEN) and h_g.shape == (LAYERS, B, HIDDEN)
    assert jnp.allclose(out_g, out_ref, atol=1e-5, rtol=1e-5)
    assert jnp.allclose(h_g, h_ref, atol=1e-5, rtol=1e-5)

    # --- LSTM encoder ---
    lstm_params = init_encoder_params(kp_lstm, "LSTM", ENC_IN, HIDDEN, LAYERS)
    out_l, (h_l, c_l) = encoder_forward(x, lstm_params, cell="LSTM")
    jax.block_until_ready((out_l, h_l, c_l))
    out_ref_l, (h_ref_l, c_ref_l) = _lstm_ref(x, lstm_params)
    assert out_l.shape == (T, B, HIDDEN)
    assert h_l.shape == (LAYERS, B, HIDDEN) and c_l.shape == (LAYERS, B, HIDDEN)
    assert jnp.allclose(out_l, out_ref_l, atol=1e-5, rtol=1e-5)
    assert jnp.allclose(h_l, h_ref_l, atol=1e-5, rtol=1e-5)
    assert jnp.allclose(c_l, c_ref_l, atol=1e-5, rtol=1e-5)

    print("KERNEL_OK")
</pallas_src>

<mosaic_0001>
module attributes {stable_mosaic.version = 11 : i64} {
  func.func @_proj_kernel(%arg0: memref<64x4xf32, #tpu.memory_space<vmem>>, %arg1: memref<4x96xf32, #tpu.memory_space<vmem>>, %arg2: memref<1x96xf32, #tpu.memory_space<vmem>>, %arg3: memref<64x96xf32, #tpu.memory_space<vmem>>) attributes {dimension_semantics = [], scalar_prefetch = 0 : i64, scratch_operands = 0 : i64, tpu.core_type = #tpu.core_type<tc>} {
    %c0 = arith.constant 0 : index
    %c0_0 = arith.constant 0 : index
    %0 = vector.load %arg0[%c0, %c0_0] : memref<64x4xf32, #tpu.memory_space<vmem>>, vector<64x4xf32>
    %c0_1 = arith.constant 0 : index
    %c0_2 = arith.constant 0 : index
    %1 = vector.load %arg1[%c0_1, %c0_2] : memref<4x96xf32, #tpu.memory_space<vmem>>, vector<4x96xf32>
    %cst = arith.constant dense<0.000000e+00> : vector<64x96xf32>
    %2 = tpu.matmul %0, %1, %cst {dimension_numbers = #tpu.dot_dimension_numbers<[1], [0], [0], [1], [0, 0, 1, 1], [], []>} : vector<64x4xf32>, vector<4x96xf32>, vector<64x96xf32> -> vector<64x96xf32>
    %c0_3 = arith.constant 0 : index
    %c0_4 = arith.constant 0 : index
    %3 = vector.load %arg2[%c0_3, %c0_4] : memref<1x96xf32, #tpu.memory_space<vmem>>, vector<1x96xf32>
    %4 = vector.broadcast %3 : vector<1x96xf32> to vector<64x96xf32>
    %5 = arith.addf %2, %4 : vector<64x96xf32>
    %c0_5 = arith.constant 0 : index
    %c0_6 = arith.constant 0 : index
    %6 = vector.load %arg3[%c0_5, %c0_6] : memref<64x96xf32, #tpu.memory_space<vmem>>, vector<64x96xf32>
    tpu.vector_store %arg3[%c0_5, %c0_6], %5 {strides = array<i32>} : memref<64x96xf32, #tpu.memory_space<vmem>>, vector<64x96xf32>,
    return
  }
}

module attributes {stable_mosaic.version = 11 : i64} {
  func.func @_gru_rec_kernel(%arg0: memref<8x8x96xf32, #tpu.memory_space<vmem>>, %arg1: memref<32x96xf32, #tpu.memory_space<vmem>>, %arg2: memref<1x32xf32, #tpu.memory_space<vmem>>, %arg3: memref<8x8x32xf32, #tpu.memory_space<vmem>>, %arg4: memref<8x32xf32, #tpu.memory_space<vmem>>) attributes {dimension_semantics = [], scalar_prefetch = 0 : i64, scratch_operands = 0 : i64, tpu.core_type = #tpu.core_type<tc>} {
    %c0 = arith.constant 0 : index
    %c0_0 = arith.constant 0 : index
    %0 = vector.load %arg1[%c0, %c0_0] : memref<32x96xf32, #tpu.memory_space<vmem>>, vector<32x96xf32>
    %c0_1 = arith.constant 0 : index
    %c0_2 = arith.constant 0 : index
    %1 = vector.load %arg2[%c0_1, %c0_2] : memref<1x32xf32, #tpu.memory_space<vmem>>, vector<1x32xf32>
    %cst = arith.constant 0.000000e+00 : f32
    %2 = vector.broadcast %cst : f32 to vector<8x32xf32>
    %c0_i32 = arith.constant 0 : i32
    %c8_i32 = arith.constant 8 : i32
    %3 = arith.addi %c0_i32, %c8_i32 : i32
    %c1_i32 = arith.constant 1 : i32
    %4 = scf.for %arg5 = %c0_i32 to %3 step %c1_i32 iter_args(%arg6 = %2) -> (vector<8x32xf32>)  : i32 {
      %6 = arith.index_cast %arg5 : i32 to index
      %c0_6 = arith.constant 0 : index
      %c0_7 = arith.constant 0 : index
      %7 = vector.load %arg0[%6, %c0_6, %c0_7] : memref<8x8x96xf32, #tpu.memory_space<vmem>>, vector<1x8x96xf32>
      %8 = vector.shape_cast %7 : vector<1x8x96xf32> to vector<8x96xf32>
      %cst_8 = arith.constant dense<0.000000e+00> : vector<8x96xf32>
      %9 = tpu.matmul %arg6, %0, %cst_8 {dimension_numbers = #tpu.dot_dimension_numbers<[1], [0], [0], [1], [0, 0, 1, 1], [], []>} : vector<8x32xf32>, vector<32x96xf32>, vector<8x96xf32> -> vector<8x96xf32>
      %10 = vector.extract_strided_slice %8 {offsets = [0, 0], sizes = [8, 32], strides = [1, 1]} : vector<8x96xf32> to vector<8x32xf32>
      %11 = vector.extract_strided_slice %9 {offsets = [0, 0], sizes = [8, 32], strides = [1, 1]} : vector<8x96xf32> to vector<8x32xf32>
      %12 = arith.addf %10, %11 : vector<8x32xf32>
      %13 = arith.negf %12 : vector<8x32xf32>
      %14 = math.exp %13 : vector<8x32xf32>
      %cst_9 = arith.constant 1.000000e+00 : f32
      %15 = vector.broadcast %cst_9 : f32 to vector<8x32xf32>
      %16 = arith.addf %15, %14 : vector<8x32xf32>
      %17 = arith.divf %15, %16 : vector<8x32xf32>
      %18 = vector.extract_strided_slice %8 {offsets = [0, 32], sizes = [8, 32], strides = [1, 1]} : vector<8x96xf32> to vector<8x32xf32>
      %19 = vector.extract_strided_slice %9 {offsets = [0, 32], sizes = [8, 32], strides = [1, 1]} : vector<8x96xf32> to vector<8x32xf32>
      %20 = arith.addf %18, %19 : vector<8x32xf32>
      %21 = arith.negf %20 : vector<8x32xf32>
      %22 = math.exp %21 : vector<8x32xf32>
      %cst_10 = arith.constant 1.000000e+00 : f32
      %23 = vector.broadcast %cst_10 : f32 to vector<8x32xf32>
      %24 = arith.addf %23, %22 : vector<8x32xf32>
      %25 = arith.divf %23, %24 : vector<8x32xf32>
      %26 = vector.extract_strided_slice %8 {offsets = [0, 64], sizes = [8, 32], strides = [1, 1]} : vector<8x96xf32> to vector<8x32xf32>
      %27 = vector.extract_strided_slice %9 {offsets = [0, 64], sizes = [8, 32], strides = [1, 1]} : vector<8x96xf32> to vector<8x32xf32>
      %28 = vector.broadcast %1 : vector<1x32xf32> to vector<8x32xf32>
      %29 = arith.addf %27, %28 : vector<8x32xf32>
      %30 = arith.mulf %17, %29 : vector<8x32xf32>
      %31 = arith.addf %26, %30 : vector<8x32xf32>
      %32 = math.tanh %31 : vector<8x32xf32>
      %cst_11 = arith.constant 1.000000e+00 : f32
      %33 = vector.broadcast %cst_11 : f32 to vector<8x32xf32>
      %34 = arith.subf %33, %25 : vector<8x32xf32>
      %35 = arith.mulf %34, %32 : vector<8x32xf32>
      %36 = arith.mulf %25, %arg6 : vector<8x32xf32>
      %37 = arith.addf %35, %36 : vector<8x32xf32>
      %38 = arith.index_cast %arg5 : i32 to index
      %c0_12 = arith.constant 0 : index
      %c0_13 = arith.constant 0 : index
      %39 = vector.load %arg3[%38, %c0_12, %c0_13] : memref<8x8x32xf32, #tpu.memory_space<vmem>>, vector<1x8x32xf32>
      %40 = vector.shape_cast %39 : vector<1x8x32xf32> to vector<8x32xf32>
      %41 = vector.shape_cast %37 : vector<8x32xf32> to vector<1x8x32xf32>
      tpu.vector_store %arg3[%38, %c0_12, %c0_13], %41 {strides = array<i32>} : memref<8x8x32xf32, #tpu.memory_space<vmem>>, vector<1x8x32xf32>,
      scf.yield %37 : vector<8x32xf32>
    }
    %c8_i32_3 = arith.constant 8 : i32
    %c0_4 = arith.constant 0 : index
    %c0_5 = arith.constant 0 : index
    %5 = vector.load %arg4[%c0_4, %c0_5] : memref<8x32xf32, #tpu.memory_space<vmem>>, vector<8x32xf32>
    tpu.vector_store %arg4[%c0_4, %c0_5], %4 {strides = array<i32>} : memref<8x32xf32, #tpu.memory_space<vmem>>, vector<8x32xf32>,
    return
  }
}

module attributes {stable_mosaic.version = 11 : i64} {
  func.func @_proj_kernel(%arg0: memref<64x32xf32, #tpu.memory_space<vmem>>, %arg1: memref<32x96xf32, #tpu.memory_space<vmem>>, %arg2: memref<1x96xf32, #tpu.memory_space<vmem>>, %arg3: memref<64x96xf32, #tpu.memory_space<vmem>>) attributes {dimension_semantics = [], scalar_prefetch = 0 : i64, scratch_operands = 0 : i64, tpu.core_type = #tpu.core_type<tc>} {
    %c0 = arith.constant 0 : index
    %c0_0 = arith.constant 0 : index
    %0 = vector.load %arg0[%c0, %c0_0] : memref<64x32xf32, #tpu.memory_space<vmem>>, vector<64x32xf32>
    %c0_1 = arith.constant 0 : index
    %c0_2 = arith.constant 0 : index
    %1 = vector.load %arg1[%c0_1, %c0_2] : memref<32x96xf32, #tpu.memory_space<vmem>>, vector<32x96xf32>
    %cst = arith.constant dense<0.000000e+00> : vector<64x96xf32>
    %2 = tpu.matmul %0, %1, %cst {dimension_numbers = #tpu.dot_dimension_numbers<[1], [0], [0], [1], [0, 0, 1, 1], [], []>} : vector<64x32xf32>, vector<32x96xf32>, vector<64x96xf32> -> vector<64x96xf32>
    %c0_3 = arith.constant 0 : index
    %c0_4 = arith.constant 0 : index
    %3 = vector.load %arg2[%c0_3, %c0_4] : memref<1x96xf32, #tpu.memory_space<vmem>>, vector<1x96xf32>
    %4 = vector.broadcast %3 : vector<1x96xf32> to vector<64x96xf32>
    %5 = arith.addf %2, %4 : vector<64x96xf32>
    %c0_5 = arith.constant 0 : index
    %c0_6 = arith.constant 0 : index
    %6 = vector.load %arg3[%c0_5, %c0_6] : memref<64x96xf32, #tpu.memory_space<vmem>>, vector<64x96xf32>
    tpu.vector_store %arg3[%c0_5, %c0_6], %5 {strides = array<i32>} : memref<64x96xf32, #tpu.memory_space<vmem>>, vector<64x96xf32>,
    return
  }
}

</mosaic_0001>

<bundles_post_ra>
// kernel: encoder_forward.6
= control target key start
LH: loop header
LB: loop body
LE: loop exit
PB: predicated region body
PF: predicated region fallthrough
CT: control target
= control target key end

     0   :  { %vm33_vm0 = vcmask 261120   ;;  %vm163_vm1 = vcmask 785408   ;;  %s324_s1 = inlined_call_operand.vmem [shape: f32[32,96], index: 1, kind: input, shape index: {}]   ;;  %s325_s0 = inlined_call_operand.vmem [shape: f32[64,32], index: 0, kind: input, shape index: {}]   ;;  %s326_s2 = inlined_call_operand.vmem [shape: f32[1,96], index: 2, kind: input, shape index: {}]   ;;  %s327_s3 = inlined_call_operand.vmem [shape: f32[64,96], index: 3, kind: output, shape index: {}]  }
   0x1   :  { %v25_v0 = vld [vmem:[%s324_s1 + $0x18] sm:$0xff]  ;;  %v24_v1 = vld [vmem:[%s324_s1 + $0x10] sm:$0xff]  ;;  %v23_v2 = vld [vmem:[%s324_s1 + $0x8] sm:$0xff] }
   0x2   :  { %197 = vmatprep.subr.mxu0 %v25_v0  ;;  %217 = vmatprep.subr.mxu1 %v25_v0  ;;  %v22_v3 = vld [vmem:[%s324_s1] sm:$0xff]  ;;  %v15_v6 = vld [vmem:[%s325_s0 + $0x8] sm:$0xff]  ;;  %v16_v8 = vld [vmem:[%s325_s0 + $0x10] sm:$0xff] }
   0x3   :  { %198 = vmatpush3.msra.mxu0 %v25_v0  ;;  %221 = vmatpush3.msra.mxu1 %v25_v0  ;;  %v14_v4 = vld [vmem:[%s325_s0] sm:$0xff]  ;;  %v19_v7 = vld [vmem:[%s325_s0 + $0x28] sm:$0xff]  ;;  %v20_v9 = vld [vmem:[%s325_s0 + $0x30] sm:$0xff] }
   0x4   :  { %199 = vmatprep.subr.mxu0 %v24_v1  ;;  %218 = vmatprep.subr.mxu1 %v24_v1  ;;  %v18_v5 = vld [vmem:[%s325_s0 + $0x20] sm:$0xff]  ;;  %v17_v10 = vld [vmem:[%s325_s0 + $0x18] sm:$0xff] }
   0x5   :  { %200 = vmatpush3.msra.mxu0 %v24_v1  ;;  %222 = vmatpush3.msra.mxu1 %v24_v1  ;;  %v21_v11 = vld [vmem:[%s325_s0 + $0x38] sm:$0xff]  ;;  %v176_v12 = vld [vmem:[%s326_s2] ss:$0 sm:$0xff] }
   0x6   :  { %201 = vmatprep.subr.mxu0 %v23_v2  ;;  %219 = vmatprep.subr.mxu1 %v23_v2 }
   0x7   :  { %202 = vmatpush3.msra.mxu0 %v23_v2  ;;  %223 = vmatpush3.msra.mxu1 %v23_v2 }
   0x8   :  { %203 = vmatprep.subr.mxu0 %v22_v3  ;;  %220 = vmatprep.subr.mxu1 %v22_v3 }
   0x9   :  { %204 = vmatpush3.msra.mxu0 %v22_v3  ;;  %224 = vmatpush3.msra.mxu1 %v22_v3 }
   0xa   :  { %205 = vmatprep.mubr.msk.f32.mxu0 %vm33_vm0, %v14_v4  ;;  %211 = vmatprep.mubr.msk.f32.mxu1 %vm33_vm0, %v18_v5 }
   0xb   :  { %206 = vmatmul.mubr.msk.f32.vlgmr.msra.gmra.mxu0 %vm33_vm0, %v15_v6  ;;  %212 = vmatmul.mubr.msk.f32.vlgmr.msra.gmra.mxu1 %vm33_vm0, %v19_v7 }
   0xc   :  { %208 = vmatprep.mubr.msk.f32.mxu0 %vm33_vm0, %v16_v8  ;;  %214 = vmatprep.mubr.msk.f32.mxu1 %vm33_vm0, %v20_v9 }
   0xf   :  { %209 = vmatmul.mubr.msk.f32.gmra.mxu0 %vm33_vm0, %v17_v10  ;;  %215 = vmatmul.mubr.msk.f32.gmra.mxu1 %vm33_vm0, %v21_v11 }
  0xcb   :  { %v207_v13 = vpop.f32.mrf.mxu0  ;;  %v213_v14 = vpop.f32.mrf.mxu1 }
  0xcc   :  { %v130_v15 = vadd.f32 %v207_v13, %v176_v12  ;;  %v150_v16 = vadd.f32 %v213_v14, %v176_v12 }
  0xcd   :  { %v124_v17 = vpop.f32.mrf.mxu0  ;;  %v144_v18 = vpop.f32.mrf.mxu1 }
  0xce   :  { %165 = vst.msk [vmem:[%s327_s3 + $0x8] sm:$0xff] %vm163_vm1, %v130_v15  ;;  %169 = vst.msk [vmem:[%s327_s3 + $0x28] sm:$0xff] %vm163_vm1, %v150_v16  ;;  %v125_v19 = vadd.f32 %v176_v12, %v124_v17  ;;  %v145_v20 = vadd.f32 %v176_v12, %v144_v18 }
  0xcf   :  { %v210_v21 = vpop.f32.mrf.mxu0  ;;  %v216_v22 = vpop.f32.mrf.mxu1 }
  0xd0   :  { %164 = vst.msk [vmem:[%s327_s3] sm:$0xff] %vm163_vm1, %v125_v19  ;;  %168 = vst.msk [vmem:[%s327_s3 + $0x20] sm:$0xff] %vm163_vm1, %v145_v20  ;;  %v140_v23 = vadd.f32 %v210_v21, %v176_v12  ;;  %v160_v24 = vadd.f32 %v216_v22, %v176_v12 }
  0xd1   :  { %v134_v25 = vpop.f32.mrf.mxu0  ;;  %v154_v26 = vpop.f32.mrf.mxu1 }
  0xd2   :  { %167 = vst.msk [vmem:[%s327_s3 + $0x18] sm:$0xff] %vm163_vm1, %v140_v23  ;;  %171 = vst.msk [vmem:[%s327_s3 + $0x38] sm:$0xff] %vm163_vm1, %v160_v24  ;;  %v135_v27 = vadd.f32 %v176_v12, %v134_v25  ;;  %v155_v28 = vadd.f32 %v176_v12, %v154_v26 }
  0xd4   :  { %166 = vst.msk [vmem:[%s327_s3 + $0x10] sm:$0xff] %vm163_vm1, %v135_v27  ;;  %170 = vst.msk [vmem:[%s327_s3 + $0x30] sm:$0xff] %vm163_vm1, %v155_v28 }

// kernel: encoder_forward.5
= control target key start
LH: loop header
LB: loop body
LE: loop exit
PB: predicated region body
PF: predicated region fallthrough
CT: control target
= control target key end

     0   :  { %v229_v5 = vmov 0.0   ;;  %s288_s25 = smov 0   ;;  %s315_s0 = inlined_call_operand.vmem [shape: f32[8,8,96], index: 0, kind: input, shape index: {}]   ;;  %s316_s1 = inlined_call_operand.vmem [shape: f32[32,96], index: 1, kind: input, shape index: {}]   ;;  %s317_s2 = inlined_call_operand.vmem [shape: f32[1,32], index: 2, kind: input, shape index: {}]   ;;  %s318_s3 = inlined_call_operand.vmem [shape: f32[8,8,32], index: 3, kind: output, shape index: {0}]   ;;  %s319_s4 = inlined_call_operand.vmem [shape: f32[8,32], index: 4, kind: output, shape index: {1}]  }
   0x1   :  { %v270_v0 = vld [vmem:[%s316_s1] sm:$0xff]  ;;  %v275_v1 = vld [vmem:[%s316_s1 + $0x8] sm:$0xff]  ;;  %v280_v2 = vld [vmem:[%s316_s1 + $0x10] sm:$0xff] }
   0x2   :  { %v19_v3 = vld [vmem:[%s316_s1 + $0x18] sm:$0xff]  ;;  %v177_v4 = vld [vmem:[%s317_s2] ss:$0 sm:$0xff] }
   0x3 LB: > { %v237_v6 = vmov 0.0   ;;  %vm238_vm0 = vmmov 0   ;;  %s239_s26 = smov 96   ;;  %s240_s1 = smov 64   ;;  %vm34_vm1 = vcmask 261120   ;;  %s235_s25 = sphi %s288_s25, %s26_s25   ;;  %v231_v5 = vphi %v229_v5, %v230_v5  }
   0x4   : > { %183 = vmatprep.subr.mxu0 %v237_v6  ;;  %191 = vmatprep.mubr.msk.f32.mxu0 %vm238_vm0, %v237_v6  ;;  %s174_s2 = sshll.u32 %s235_s25, 3  ;;  %s26_s25 = sadd.s32 1, %s235_s25  }
   0x5   : > { %32 = vrot.lane.b32.xlu0 %v231_v5, %s239_s26  ;;  %184 = vmatpush3.msra.mxu0 %v19_v3  ;;  %s29_s29 = scalar_lea.vmem %s315_s0, %s174_s2  ;;  %s146_s6 = scalar_lea.vmem %s318_s3, %s174_s2 }
   0x6   : > { %185 = vmatprep.subr.mxu0 %v237_v6  ;;  %v30_v12 = vld [vmem:[%s29_s29] sm:$0xff]  ;;  %p23_p0 = scmp.ge.s32.totalorder %s26_s25, 8  }
   0x7   : > { %186 = vmatpush3.msra.mxu0 %v280_v2  ;;  %s241_s7 = smov (%p23_p0), 96  }
   0x8   : > { %187 = vmatprep.subr.mxu0 %v237_v6 }
   0x9   : > { %188 = vmatpush3.msra.mxu0 %v275_v1  ;;  %119 = vrot.lane.b32.xlu0 %v177_v4, %s240_s1 }
   0xa   : > { %189 = vmatprep.subr.mxu0 %v237_v6 }
   0xb   : > { %190 = vmatpush3.msra.mxu0 %v270_v0 }
  0x77   : > { %v33_v7 = vpop.permute.xlu0 %32 }
  0x78   : > { %192 = vmatmul.mubr.msk.f32.vlgmr.msra.gmra.mxu0 %vm34_vm1, %v33_v7 }
  0x7b   : > { %v120_v8 = vpop.permute.xlu0 %119 }
 0x138   : > { %v103_v9 = vpop.f32.mrf.mxu0 }
 0x139   : > { %v122_v10 = vadd.f32 %v120_v8, %v103_v9  ;;  %v107_v13 = vadd.f32 %v103_v9, %v30_v12 }
 0x13a   : > { %v193_v11 = vpop.f32.mrf.mxu0 }
 0x13b   : > { %124 = vrot.lane.b32.xlu1 %v122_v10, %s240_s1  ;;  %v176_v14 = vmul.f32 -1.442695, %v107_v13 }
 0x13d   : > { %215 = vpow2.f32 %v176_v14 }
 0x14a   : > { %v216_v15 = vpop.eup %215 }
 0x14b   : > { %v111_v16 = vadd.f32 1.0, %v216_v15 }
 0x14d   : > { %217 = vrcp.f32 %v111_v16 }
 0x15a   : > { %v218_v17 = vpop.eup %217 }
 0x15b   : > { %v134_v23 = vsub.f32 1.0, %v218_v17  ;;  %v140_v25 = vmul.f32 %v231_v5, %v218_v17 }
 0x1ad   : > { %v125_v18 = vpop.permute.xlu1 %124 }
 0x1ae   : > { %v127_v19 = vmul.f32 %v218_v17, %v125_v18 }
 0x1b0   : > { %129 = vrot.lane.b32.xlu1 %v127_v19, %s240_s1 }
 0x222   : > { %v130_v20 = vpop.permute.xlu1 %129 }
 0x223   : > { %v132_v21 = vadd.f32 %v130_v20, %v30_v12 }
 0x225   : > { %219 = vtanh.f32 %v132_v21 }
 0x232   : > { %v220_v22 = vpop.eup %219 }
 0x233   : > { %136 = vrot.lane.b32.xlu0 %v220_v22, %s239_s26 }
 0x2a5   : > { %v137_v24 = vpop.permute.xlu0 %136 }
 0x2a6   : > { %v139_v26 = vmul.f32 %v137_v24, %v134_v23 }
 0x2a8   : > { %v141_v27 = vadd.f32 %v140_v25, %v139_v26  }
 0x2aa   : > { %143 = vrot.lane.b32.xlu1 %v141_v27, %s239_s26  ;;  %v230_v5 = vmov %v141_v27   ;;  %149 = vrot.lane.b32.xlu0 (%p23_p0), %v141_v27, %s241_s7 }
 0x319   :  { %25 = sbr.rel (!%p23_p0) target bundleno = 3 (0x3), region = 49 }
 0x31c   : > { %v144_v28 = vpop.permute.xlu1 %143  ;;  %v150_v29 = vpop.permute.xlu0 (%p23_p0), %149 }
 0x31d   : > { %147 = vst.msk [vmem:[%s146_s6] sm:$0xff] %vm34_vm1, %v144_v28  ;;  %153 = vst.msk [vmem:[%s319_s4] sm:$0xff] (%p23_p0), %vm34_vm1, %v150_v29 }

// kernel: encoder_forward.4
= control target key start
LH: loop header
LB: loop body
LE: loop exit
PB: predicated region body
PF: predicated region fallthrough
CT: control target
= control target key end

     0   :  { %vm55_vm0 = vcmask 1043456   ;;  %vm30_vm1 = vcmask 31744   ;;  %vm164_vm2 = vcmask 785408   ;;  %s302_s1 = inlined_call_operand.vmem [shape: f32[4,96], index: 1, kind: input, shape index: {}]   ;;  %s303_s0 = inlined_call_operand.vmem [shape: f32[64,4], index: 0, kind: input, shape index: {}]   ;;  %s304_s2 = inlined_call_operand.vmem [shape: f32[1,96], index: 2, kind: input, shape index: {}]   ;;  %s305_s3 = inlined_call_operand.vmem [shape: f32[64,96], index: 3, kind: output, shape index: {}]  }
   0x1   :  { %v22_v0 = vld [vmem:[%s302_s1] sm:$0xf]  ;;  %v15_v3 = vld [vmem:[%s303_s0 + $0x8] sm:$0xff]  ;;  %v16_v5 = vld [vmem:[%s303_s0 + $0x10] sm:$0xff] }
   0x2   :  { %v14_v1 = vld [vmem:[%s303_s0] sm:$0xff]  ;;  %196 = vmatprep.subr.msk.mxu0 %vm55_vm0, %v22_v0  ;;  %210 = vmatprep.subr.msk.mxu1 %vm55_vm0, %v22_v0  ;;  %v19_v4 = vld [vmem:[%s303_s0 + $0x28] sm:$0xff]  ;;  %v20_v6 = vld [vmem:[%s303_s0 + $0x30] sm:$0xff] }
   0x3   :  { %v18_v2 = vld [vmem:[%s303_s0 + $0x20] sm:$0xff]  ;;  %197 = vmatpush3.msk.msra.mxu0 %vm55_vm0, %v22_v0  ;;  %211 = vmatpush3.msk.msra.mxu1 %vm55_vm0, %v22_v0  ;;  %v17_v7 = vld [vmem:[%s303_s0 + $0x18] sm:$0xff] }
   0x4   :  { %198 = vmatprep.mubr.msk.f32.mxu0 %vm30_vm1, %v14_v1  ;;  %204 = vmatprep.mubr.msk.f32.mxu1 %vm30_vm1, %v18_v2  ;;  %v21_v8 = vld [vmem:[%s303_s0 + $0x38] sm:$0xff]  ;;  %v177_v9 = vld [vmem:[%s304_s2] ss:$0 sm:$0xff] }
   0x5   :  { %199 = vmatmul.mubr.msk.f32.vlgmr.msra.gmra.mxu0 %vm30_vm1, %v15_v3  ;;  %205 = vmatmul.mubr.msk.f32.vlgmr.msra.gmra.mxu1 %vm30_vm1, %v19_v4 }
   0x6   :  { %201 = vmatprep.mubr.msk.f32.mxu0 %vm30_vm1, %v16_v5  ;;  %207 = vmatprep.mubr.msk.f32.mxu1 %vm30_vm1, %v20_v6 }
   0x9   :  { %202 = vmatmul.mubr.msk.f32.gmra.mxu0 %vm30_vm1, %v17_v7  ;;  %208 = vmatmul.mubr.msk.f32.gmra.mxu1 %vm30_vm1, %v21_v8 }
  0xc5   :  { %v200_v10 = vpop.f32.mrf.mxu0  ;;  %v206_v11 = vpop.f32.mrf.mxu1 }
  0xc6   :  { %v131_v12 = vadd.f32 %v200_v10, %v177_v9  ;;  %v151_v13 = vadd.f32 %v206_v11, %v177_v9 }
  0xc7   :  { %v125_v14 = vpop.f32.mrf.mxu0  ;;  %v145_v15 = vpop.f32.mrf.mxu1 }
  0xc8   :  { %166 = vst.msk [vmem:[%s305_s3 + $0x8] sm:$0xff] %vm164_vm2, %v131_v12  ;;  %170 = vst.msk [vmem:[%s305_s3 + $0x28] sm:$0xff] %vm164_vm2, %v151_v13  ;;  %v126_v16 = vadd.f32 %v177_v9, %v125_v14  ;;  %v146_v17 = vadd.f32 %v177_v9, %v145_v15 }
  0xc9   :  { %v203_v18 = vpop.f32.mrf.mxu0  ;;  %v209_v19 = vpop.f32.mrf.mxu1 }
  0xca   :  { %165 = vst.msk [vmem:[%s305_s3] sm:$0xff] %vm164_vm2, %v126_v16  ;;  %169 = vst.msk [vmem:[%s305_s3 + $0x20] sm:$0xff] %vm164_vm2, %v146_v17  ;;  %v141_v20 = vadd.f32 %v203_v18, %v177_v9  ;;  %v161_v21 = vadd.f32 %v209_v19, %v177_v9 }
  0xcb   :  { %v135_v22 = vpop.f32.mrf.mxu0  ;;  %v155_v23 = vpop.f32.mrf.mxu1 }
  0xcc   :  { %168 = vst.msk [vmem:[%s305_s3 + $0x18] sm:$0xff] %vm164_vm2, %v141_v20  ;;  %172 = vst.msk [vmem:[%s305_s3 + $0x38] sm:$0xff] %vm164_vm2, %v161_v21  ;;  %v136_v24 = vadd.f32 %v177_v9, %v135_v22  ;;  %v156_v25 = vadd.f32 %v177_v9, %v155_v23 }
  0xce   :  { %167 = vst.msk [vmem:[%s305_s3 + $0x10] sm:$0xff] %vm164_vm2, %v136_v24  ;;  %171 = vst.msk [vmem:[%s305_s3 + $0x30] sm:$0xff] %vm164_vm2, %v156_v25 }

</bundles_post_ra>
